<compile_context>
chip_gen: v5e
topology: v5e:2x2
jax: 0.10.0
libtpu: 0.0.40
codegen_flags: <defaults>
</compile_context>

<pallas_src>
import functools

import jax
import jax.numpy as jnp
from jax.experimental import pallas as pl
from jax.experimental.pallas import tpu as pltpu


_NEG_INF = -1000000.0  # matches masked_softmax_ replacement value


def _leaky_relu(x, slope=0.2):
    return jnp.where(x >= 0, x, slope * x)


def _vmem_limit_bytes():
    """Device-aware scoped-VMEM budget: ~3/4 of physical, capped at 96 MiB.

    v5e/v6e (128 MiB physical) -> 96 MiB, v7x (64 MiB per TC) -> 48 MiB.
    """
    try:
        cap = int(pltpu.get_tpu_info().vmem_capacity_bytes)
    except Exception:  # conservative fallback = v7x physical VMEM per TC
        cap = 64 * 1024 * 1024
    return max(16 * 1024 * 1024, min((cap * 3) // 4, 96 * 1024 * 1024))


def _clamp_tile(tile, extent, per_item_bytes, budget_bytes, min_tile=8):
    """Shrink a tile (power-of-two halving, >= min_tile) until its
    double-buffered working set fits in budget_bytes."""
    tile = min(tile, extent)
    while tile > min_tile and 2 * tile * per_item_bytes > budget_bytes:
        tile //= 2
    return max(min(tile, extent), 1)


# ---------------------------------------------------------------------------
# Stage 1: proj_before over all N nodes, tiled over N.
# ---------------------------------------------------------------------------
def _proj_kernel(wv_ref, wp_ref, proj_ref):
    # wv_ref [TILE_N, Cin] bf16, wp_ref [Cin, Cout] bf16 -> MXU matmul with
    # f32 accumulation; LeakyReLU(0.2) epilogue kept in f32 (no bf16 VPU on v5e).
    acc = jnp.dot(wv_ref[...], wp_ref[...], preferred_element_type=jnp.float32)
    proj_ref[...] = _leaky_relu(acc).astype(proj_ref.dtype)


def _proj_before(word_vec_mm, w_proj_mm, *, tile_n, vmem_limit):
    N, Cin = word_vec_mm.shape
    Cout = w_proj_mm.shape[1]
    # Double-buffered input (bf16) + output (f32) rows; weight block is small
    # and constant across the grid.
    per_row = Cin * 2 + Cout * 4
    budget = max(vmem_limit // 2 - 2 * Cin * Cout * 2, 1 << 20)
    tile_n = _clamp_tile(tile_n, N, per_row, budget)
    return pl.pallas_call(
        _proj_kernel,
        out_shape=jax.ShapeDtypeStruct((N, Cout), jnp.float32),
        grid=(pl.cdiv(N, tile_n),),
        in_specs=[
            pl.BlockSpec((tile_n, Cin), lambda i: (i, 0)),
            pl.BlockSpec((Cin, Cout), lambda i: (0, 0)),
        ],
        out_specs=pl.BlockSpec((tile_n, Cout), lambda i: (i, 0)),
        compiler_params=pltpu.CompilerParams(
            dimension_semantics=("parallel",),
            vmem_limit_bytes=vmem_limit,
        ),
    )(word_vec_mm, w_proj_mm)


# ---------------------------------------------------------------------------
# Stage 2: attention + neighbour aggregation, tiled over B source nodes.
# All blocks are 2-D / lane-dense except the two [TB, K, C] feature blocks.
# ---------------------------------------------------------------------------
def _masked_softmax(x, mask):
    # masked_softmax_: masked positions -> -1e6, softmax over last axis.
    xm = jnp.where(mask > 0.5, x, jnp.full_like(x, _NEG_INF))
    m = jnp.max(xm, axis=-1, keepdims=True)
    e = jnp.exp(xm - m)
    s = jnp.sum(e, axis=-1, keepdims=True)
    return e * pl.reciprocal(s, approx=True)  # EUP reciprocal (free slot)


def _attn_kernel(q_ref, k_ref, kp_ref, auxs_ref, mask_ref, rows_ref):
    # q_ref    [TB, Cin]      bf16  raw source-node features
    # k_ref    [TB, K, Cin]   bf16  raw neighbour features
    # kp_ref   [TB, K, Cout]  bf16  proj_before(neighbours), pre-gathered
    # auxs_ref [TB, K]        f32   precomputed aux Linear(4->1) scores
    # mask_ref [TB, K]        f32
    # rows_ref [TB, Cout]     f32
    q = q_ref[...].astype(jnp.float32)
    k = k_ref[...].astype(jnp.float32)

    # attention_scores = (query . key) * 5  -> [TB, K]
    # VPU broadcast-FMA form: a unit-M batched matmul would use 1 of 256 MXU
    # rows per source node and pay a weight push per row.
    scores = jnp.sum(q[:, None, :] * k, axis=-1) * 5.0

    # aux_attn = Sigmoid(Linear(4->1))  (linear precomputed in the wrapper)
    aux_sc = jax.nn.sigmoid(auxs_ref[...])                      # [TB, K]

    mask = mask_ref[...]
    probs = 0.5 * (_masked_softmax(scores, mask) + _masked_softmax(aux_sc, mask))

    # Weighted aggregation over neighbours -> one output row per source node.
    kp = kp_ref[...].astype(jnp.float32)                        # [TB, K, Cout]
    rows = jnp.sum(probs[:, :, None] * kp, axis=1)              # [TB, Cout]
    rows_ref[...] = rows.astype(rows_ref.dtype)


def _attention_rows(q2, k3, kp3, aux_lin, mask2, *, tile_b, vmem_limit):
    B, K, Cin = k3.shape
    Cout = kp3.shape[-1]
    # Per source-row bytes across all double-buffered streams.
    per_row = (Cin * 2 + K * Cin * 2 + K * Cout * 2 + K * 4 + K * 4 + Cout * 4)
    tile_b = _clamp_tile(tile_b, B, per_row, vmem_limit // 2)
    return pl.pallas_call(
        _attn_kernel,
        out_shape=jax.ShapeDtypeStruct((B, Cout), jnp.float32),
        grid=(pl.cdiv(B, tile_b),),
        in_specs=[
            pl.BlockSpec((tile_b, Cin), lambda i: (i, 0)),
            pl.BlockSpec((tile_b, K, Cin), lambda i: (i, 0, 0)),
            pl.BlockSpec((tile_b, K, Cout), lambda i: (i, 0, 0)),
            pl.BlockSpec((tile_b, K), lambda i: (i, 0)),
            pl.BlockSpec((tile_b, K), lambda i: (i, 0)),
        ],
        out_specs=pl.BlockSpec((tile_b, Cout), lambda i: (i, 0)),
        compiler_params=pltpu.CompilerParams(
            dimension_semantics=("parallel",),
            vmem_limit_bytes=vmem_limit,
        ),
    )(q2, k3, kp3, aux_lin, mask2)


# ---------------------------------------------------------------------------
# Forward wrapper (jit): gathers / scatter + tiny aux linear as XLA glue,
# the heavy math in Pallas.
# ---------------------------------------------------------------------------
@functools.partial(jax.jit, static_argnames=("tile_n", "tile_b"))
def graph_att_forward(word_vec, src_idx, neighs_idx, aux, src_mask,
                      w_proj, w_aux, *, tile_n=1024, tile_b=256):
    """word_vec [N,Cin], src_idx [B], neighs_idx [B,K], aux [B,K,4],
    src_mask [B,K], w_proj [Cin,Cout] (PyTorch weight^T), w_aux [1,4]."""
    vmem_limit = _vmem_limit_bytes()

    # bf16 inputs for the MXU / bandwidth-heavy streams; f32 accumulation and
    # elementwise math stay in f32.
    wv_mm = word_vec.astype(jnp.bfloat16)
    wp_mm = w_proj.astype(jnp.bfloat16)

    # Stage 1: supports = LeakyReLU(word_vec @ Wproj) -> [N, Cout] f32
    proj = _proj_before(wv_mm, wp_mm, tile_n=tile_n, vmem_limit=vmem_limit)

    # Indexing glue (single fused XLA gathers). kp is cast to bf16 so the
    # dominant Stage-2 stream is halved in both HBM and VMEM.
    q2 = wv_mm[src_idx]                                        # [B, Cin]    bf16
    k3 = wv_mm[neighs_idx]                                     # [B, K, Cin] bf16
    kp3 = proj[neighs_idx].astype(jnp.bfloat16)                # [B, K, Cout] bf16
    # aux Linear(4->1, bias=False) precomputed here; sigmoid stays in-kernel.
    aux_lin = (aux.astype(jnp.float32)
               @ w_aux.astype(jnp.float32).T)[..., 0]          # [B, K] f32
    mask2 = src_mask.astype(jnp.float32)                       # [B, K] f32

    # Stage 2: attention probs + aggregation -> [B, Cout] f32
    rows = _attention_rows(q2, k3, kp3, aux_lin, mask2,
                           tile_b=tile_b, vmem_limit=vmem_limit)

    # supports[src_idx] = aggregated rows  (in-place scatter under jit)
    # TODO(synk): with duplicate src_idx the scatter winner is unspecified;
    #             the test guarantees unique source indices.
    return proj.at[src_idx].set(rows)


# ---------------------------------------------------------------------------
# Pure-JAX reference mirroring the PyTorch forward.
# ---------------------------------------------------------------------------
def _ref_masked_softmax(x, mask):
    xm = jnp.where(mask > 0.5, x, jnp.full_like(x, _NEG_INF))
    m = jnp.max(xm, axis=-1, keepdims=True)
    e = jnp.exp(xm - m)
    return e / jnp.sum(e, axis=-1, keepdims=True)


def graph_att_reference(word_vec, src_idx, neighs_idx, aux, src_mask,
                        w_proj, w_aux, matmul_dtype=jnp.float32):
    """matmul_dtype=bf16 reproduces the kernel's stream precision (isolates
    the kernel implementation); matmul_dtype=f32 is the true fp32 forward."""
    wv_mm = word_vec.astype(matmul_dtype)
    wp_mm = w_proj.astype(matmul_dtype)
    q = wv_mm[src_idx]                                          # [B, Cin]
    k = wv_mm[neighs_idx]                                       # [B, K, Cin]
    scores = jnp.einsum("bc,bkc->bk", q, k,
                        preferred_element_type=jnp.float32) * 5.0
    aux_sc = jax.nn.sigmoid(
        (aux.astype(jnp.float32) @ w_aux.astype(jnp.float32).T)[..., 0])
    p1 = _ref_masked_softmax(scores, src_mask)
    p2 = _ref_masked_softmax(aux_sc, src_mask)
    proj = _leaky_relu(jnp.dot(wv_mm, wp_mm,
                               preferred_element_type=jnp.float32))  # [N,Cout]
    kp = proj[neighs_idx].astype(matmul_dtype)                  # [B, K, Cout]
    rows = jnp.einsum("bk,bkd->bd", 0.5 * (p1 + p2), kp,
                      preferred_element_type=jnp.float32)
    return proj.at[src_idx].set(rows)


def _xavier_uniform(key, shape):
    fan_in, fan_out = shape[0], shape[1]
    bound = (6.0 / (fan_in + fan_out)) ** 0.5
    return jax.random.uniform(key, shape, jnp.float32, -bound, bound)


if __name__ == "__main__":
    N, Cin, Cout, B, K = 16, 32, 32, 4, 8

    root = jax.random.PRNGKey(0)
    kw, kwp, kwa, ksrc, knb, kaux, kmask = jax.random.split(root, 7)

    word_vec = jax.random.normal(kw, (N, Cin), jnp.float32)
    w_proj = _xavier_uniform(kwp, (Cin, Cout))              # proj_before weight^T
    w_aux = _xavier_uniform(kwa, (1, 4))                    # aux_attn weight

    src_idx = jax.random.permutation(ksrc, N)[:B]           # unique source nodes
    neighs_idx = jax.random.randint(knb, (B, K), 0, N)
    aux = jax.random.normal(kaux, (B, K, 4), jnp.float32)
    src_mask = (jax.random.uniform(kmask, (B, K)) > 0.3).astype(jnp.float32)
    src_mask = src_mask.at[:, 0].set(1.0)                   # >=1 valid neighbor/row

    out = graph_att_forward(word_vec, src_idx, neighs_idx, aux, src_mask,
                            w_proj, w_aux)
    out = jax.block_until_ready(out)
    assert out.shape == (N, Cout)

    # (1) Tight check against a reference using the kernel's bf16 stream
    #     precision; residual difference is the EUP approx reciprocal in the
    #     softmax (~2e-4 relative) plus f32 accumulation-order noise.
    ref_bf16 = graph_att_reference(word_vec, src_idx, neighs_idx, aux, src_mask,
                                   w_proj, w_aux, matmul_dtype=jnp.bfloat16)
    assert jnp.allclose(out, ref_bf16, atol=2e-3, rtol=2e-3), "mismatch vs bf16 ref"

    # (2) Drift check against the true fp32 forward. bf16 quantization of
    #     word_vec feeds the *5-scaled softmax exponent, so the documented
    #     budget is deliberately generous (expected max-abs drift ~1e-1 at
    #     these magnitudes; bound accounts for a worst-case exp(2*delta)
    #     probability redistribution with delta = 5 * bf16 dot-product error).
    ref_f32 = graph_att_reference(word_vec, src_idx, neighs_idx, aux, src_mask,
                                  w_proj, w_aux, matmul_dtype=jnp.float32)
    assert jnp.allclose(out, ref_f32, atol=3e-1, rtol=3e-2), "mismatch vs fp32 ref"

    print("KERNEL_OK")
</pallas_src>

<mosaic_0001>
module attributes {stable_mosaic.version = 11 : i64} {
  func.func @_proj_kernel(%arg0: i32, %arg1: memref<16x32xbf16, #tpu.memory_space<vmem>>, %arg2: memref<32x32xbf16, #tpu.memory_space<vmem>>, %arg3: memref<16x32xf32, #tpu.memory_space<vmem>>) attributes {dimension_semantics = [#tpu.dimension_semantics<parallel>], iteration_bounds = array<i64: 1>, scalar_prefetch = 0 : i64, scratch_operands = 0 : i64, tpu.core_type = #tpu.core_type<tc>, window_params = [{transform_indices = @transform_0, window_bounds = array<i64: 16, 32>}, {pipeline_mode = #tpu.pipeline_mode<synchronous>, transform_indices = @transform_1, window_bounds = array<i64: 32, 32>}, {transform_indices = @transform_2, window_bounds = array<i64: 16, 32>}]} {
    %c0 = arith.constant 0 : index
    %c0_0 = arith.constant 0 : index
    %0 = vector.load %arg1[%c0, %c0_0] : memref<16x32xbf16, #tpu.memory_space<vmem>>, vector<16x32xbf16>
    %c0_1 = arith.constant 0 : index
    %c0_2 = arith.constant 0 : index
    %1 = vector.load %arg2[%c0_1, %c0_2] : memref<32x32xbf16, #tpu.memory_space<vmem>>, vector<32x32xbf16>
    %cst = arith.constant dense<0.000000e+00> : vector<16x32xf32>
    %2 = tpu.matmul %0, %1, %cst {dimension_numbers = #tpu.dot_dimension_numbers<[1], [0], [0], [1], [0, 0, 1, 1], [], []>} : vector<16x32xbf16>, vector<32x32xbf16>, vector<16x32xf32> -> vector<16x32xf32>
    %cst_3 = arith.constant 0.000000e+00 : f32
    %3 = vector.broadcast %cst_3 : f32 to vector<16x32xf32>
    %4 = arith.cmpf oge, %2, %3 : vector<16x32xf32>
    %cst_4 = arith.constant 2.000000e-01 : f32
    %5 = vector.broadcast %cst_4 : f32 to vector<16x32xf32>
    %6 = arith.mulf %5, %2 : vector<16x32xf32>
    %7 = arith.select %4, %2, %6 : vector<16x32xi1>, vector<16x32xf32>
    %c0_5 = arith.constant 0 : index
    %c0_6 = arith.constant 0 : index
    %8 = vector.load %arg3[%c0_5, %c0_6] : memref<16x32xf32, #tpu.memory_space<vmem>>, vector<16x32xf32>
    tpu.vector_store %arg3[%c0_5, %c0_6], %7 {strides = array<i32>} : memref<16x32xf32, #tpu.memory_space<vmem>>, vector<16x32xf32>,
    return
  }
  func.func @transform_0(%arg0: i32) -> (i32, i32) {
    %c0_i32 = arith.constant 0 : i32
    %c0_i32_0 = arith.constant 0 : i32
    return %arg0, %c0_i32 : i32, i32
  }
  func.func @transform_1(%arg0: i32) -> (i32, i32) {
    %c0_i32 = arith.constant 0 : i32
    %c0_i32_0 = arith.constant 0 : i32
    %c0_i32_1 = arith.constant 0 : i32
    return %c0_i32, %c0_i32_0 : i32, i32
  }
  func.func @transform_2(%arg0: i32) -> (i32, i32) {
    %c0_i32 = arith.constant 0 : i32
    %c0_i32_0 = arith.constant 0 : i32
    return %arg0, %c0_i32 : i32, i32
  }
}

module attributes {stable_mosaic.version = 11 : i64} {
  func.func @_attn_kernel(%arg0: i32, %arg1: memref<4x32xbf16, #tpu.memory_space<vmem>>, %arg2: memref<4x8x32xbf16, #tpu.memory_space<vmem>>, %arg3: memref<4x8x32xbf16, #tpu.memory_space<vmem>>, %arg4: memref<4x8xf32, #tpu.memory_space<vmem>>, %arg5: memref<4x8xf32, #tpu.memory_space<vmem>>, %arg6: memref<4x32xf32, #tpu.memory_space<vmem>>) attributes {dimension_semantics = [#tpu.dimension_semantics<parallel>], iteration_bounds = array<i64: 1>, scalar_prefetch = 0 : i64, scratch_operands = 0 : i64, tpu.core_type = #tpu.core_type<tc>, window_params = [{transform_indices = @transform_0, window_bounds = array<i64: 4, 32>}, {transform_indices = @transform_1, window_bounds = array<i64: 4, 8, 32>}, {transform_indices = @transform_2, window_bounds = array<i64: 4, 8, 32>}, {transform_indices = @transform_3, window_bounds = array<i64: 4, 8>}, {transform_indices = @transform_4, window_bounds = array<i64: 4, 8>}, {transform_indices = @transform_5, window_bounds = array<i64: 4, 32>}]} {
    %c0 = arith.constant 0 : index
    %c0_0 = arith.constant 0 : index
    %0 = vector.load %arg1[%c0, %c0_0] : memref<4x32xbf16, #tpu.memory_space<vmem>>, vector<4x32xbf16>
    %1 = arith.extf %0 : vector<4x32xbf16> to vector<4x32xf32>
    %c0_1 = arith.constant 0 : index
    %c0_2 = arith.constant 0 : index
    %c0_3 = arith.constant 0 : index
    %2 = vector.load %arg2[%c0_1, %c0_2, %c0_3] : memref<4x8x32xbf16, #tpu.memory_space<vmem>>, vector<4x8x32xbf16>
    %3 = arith.extf %2 : vector<4x8x32xbf16> to vector<4x8x32xf32>
    %4 = vector.shape_cast %1 : vector<4x32xf32> to vector<4x1x32xf32>
    %5 = vector.broadcast %4 : vector<4x1x32xf32> to vector<4x8x32xf32>
    %6 = arith.mulf %5, %3 : vector<4x8x32xf32>
    %cst = arith.constant dense<0.000000e+00> : vector<4x8xf32>
    %7 = vector.multi_reduction <add>, %6, %cst [2] : vector<4x8x32xf32> to vector<4x8xf32>
    %cst_4 = arith.constant 5.000000e+00 : f32
    %8 = vector.broadcast %cst_4 : f32 to vector<4x8xf32>
    %9 = arith.mulf %7, %8 : vector<4x8xf32>
    %c0_5 = arith.constant 0 : index
    %c0_6 = arith.constant 0 : index
    %10 = vector.load %arg4[%c0_5, %c0_6] : memref<4x8xf32, #tpu.memory_space<vmem>>, vector<4x8xf32>
    %11 = arith.negf %10 : vector<4x8xf32>
    %12 = math.exp %11 : vector<4x8xf32>
    %cst_7 = arith.constant 1.000000e+00 : f32
    %13 = vector.broadcast %cst_7 : f32 to vector<4x8xf32>
    %14 = arith.addf %13, %12 : vector<4x8xf32>
    %15 = arith.divf %13, %14 : vector<4x8xf32>
    %c0_8 = arith.constant 0 : index
    %c0_9 = arith.constant 0 : index
    %16 = vector.load %arg5[%c0_8, %c0_9] : memref<4x8xf32, #tpu.memory_space<vmem>>, vector<4x8xf32>
    %cst_10 = arith.constant 5.000000e-01 : f32
    %17 = vector.broadcast %cst_10 : f32 to vector<4x8xf32>
    %18 = arith.cmpf ogt, %16, %17 : vector<4x8xf32>
    %cst_11 = arith.constant -1.000000e+06 : f32
    %19 = vector.broadcast %cst_11 : f32 to vector<4x8xf32>
    %20 = arith.select %18, %9, %19 : vector<4x8xi1>, vector<4x8xf32>
    %cst_12 = arith.constant dense<0xFF800000> : vector<4xf32>
    %21 = vector.multi_reduction <maximumf>, %20, %cst_12 [1] : vector<4x8xf32> to vector<4xf32>
    %22 = vector.shape_cast %21 : vector<4xf32> to vector<4x1xf32>
    %23 = vector.broadcast %22 : vector<4x1xf32> to vector<4x8xf32>
    %24 = arith.subf %20, %23 : vector<4x8xf32>
    %25 = math.exp %24 : vector<4x8xf32>
    %cst_13 = arith.constant dense<0.000000e+00> : vector<4xf32>
    %26 = vector.multi_reduction <add>, %25, %cst_13 [1] : vector<4x8xf32> to vector<4xf32>
    %27 = vector.shape_cast %26 : vector<4xf32> to vector<4x1xf32>
    %28 = tpu.reciprocal %27 {approx = true} : vector<4x1xf32> -> vector<4x1xf32>
    %29 = vector.broadcast %28 : vector<4x1xf32> to vector<4x8xf32>
    %30 = arith.mulf %25, %29 : vector<4x8xf32>
    %cst_14 = arith.constant 5.000000e-01 : f32
    %31 = vector.broadcast %cst_14 : f32 to vector<4x8xf32>
    %32 = arith.cmpf ogt, %16, %31 : vector<4x8xf32>
    %cst_15 = arith.constant -1.000000e+06 : f32
    %33 = vector.broadcast %cst_15 : f32 to vector<4x8xf32>
    %34 = arith.select %32, %15, %33 : vector<4x8xi1>, vector<4x8xf32>
    %cst_16 = arith.constant dense<0xFF800000> : vector<4xf32>
    %35 = vector.multi_reduction <maximumf>, %34, %cst_16 [1] : vector<4x8xf32> to vector<4xf32>
    %36 = vector.shape_cast %35 : vector<4xf32> to vector<4x1xf32>
    %37 = vector.broadcast %36 : vector<4x1xf32> to vector<4x8xf32>
    %38 = arith.subf %34, %37 : vector<4x8xf32>
    %39 = math.exp %38 : vector<4x8xf32>
    %cst_17 = arith.constant dense<0.000000e+00> : vector<4xf32>
    %40 = vector.multi_reduction <add>, %39, %cst_17 [1] : vector<4x8xf32> to vector<4xf32>
    %41 = vector.shape_cast %40 : vector<4xf32> to vector<4x1xf32>
    %42 = tpu.reciprocal %41 {approx = true} : vector<4x1xf32> -> vector<4x1xf32>
    %43 = vector.broadcast %42 : vector<4x1xf32> to vector<4x8xf32>
    %44 = arith.mulf %39, %43 : vector<4x8xf32>
    %45 = arith.addf %30, %44 : vector<4x8xf32>
    %cst_18 = arith.constant 5.000000e-01 : f32
    %46 = vector.broadcast %cst_18 : f32 to vector<4x8xf32>
    %47 = arith.mulf %46, %45 : vector<4x8xf32>
    %c0_19 = arith.constant 0 : index
    %c0_20 = arith.constant 0 : index
    %c0_21 = arith.constant 0 : index
    %48 = vector.load %arg3[%c0_19, %c0_20, %c0_21] : memref<4x8x32xbf16, #tpu.memory_space<vmem>>, vector<4x8x32xbf16>
    %49 = arith.extf %48 : vector<4x8x32xbf16> to vector<4x8x32xf32>
    %50 = vector.shape_cast %47 : vector<4x8xf32> to vector<4x8x1xf32>
    %51 = vector.broadcast %50 : vector<4x8x1xf32> to vector<4x8x32xf32>
    %52 = arith.mulf %51, %49 : vector<4x8x32xf32>
    %cst_22 = arith.constant dense<0.000000e+00> : vector<4x32xf32>
    %53 = vector.multi_reduction <add>, %52, %cst_22 [1] : vector<4x8x32xf32> to vector<4x32xf32>
    %c0_23 = arith.constant 0 : index
    %c0_24 = arith.constant 0 : index
    %54 = vector.load %arg6[%c0_23, %c0_24] : memref<4x32xf32, #tpu.memory_space<vmem>>, vector<4x32xf32>
    tpu.vector_store %arg6[%c0_23, %c0_24], %53 {strides = array<i32>} : memref<4x32xf32, #tpu.memory_space<vmem>>, vector<4x32xf32>,
    return
  }
  func.func @transform_0(%arg0: i32) -> (i32, i32) {
    %c0_i32 = arith.constant 0 : i32
    %c0_i32_0 = arith.constant 0 : i32
    return %arg0, %c0_i32 : i32, i32
  }
  func.func @transform_1(%arg0: i32) -> (i32, i32, i32) {
    %c0_i32 = arith.constant 0 : i32
    %c0_i32_0 = arith.constant 0 : i32
    %c0_i32_1 = arith.constant 0 : i32
    return %arg0, %c0_i32, %c0_i32_0 : i32, i32, i32
  }
  func.func @transform_2(%arg0: i32) -> (i32, i32, i32) {
    %c0_i32 = arith.constant 0 : i32
    %c0_i32_0 = arith.constant 0 : i32
    %c0_i32_1 = arith.constant 0 : i32
    return %arg0, %c0_i32, %c0_i32_0 : i32, i32, i32
  }
  func.func @transform_3(%arg0: i32) -> (i32, i32) {
    %c0_i32 = arith.constant 0 : i32
    %c0_i32_0 = arith.constant 0 : i32
    return %arg0, %c0_i32 : i32, i32
  }
  func.func @transform_4(%arg0: i32) -> (i32, i32) {
    %c0_i32 = arith.constant 0 : i32
    %c0_i32_0 = arith.constant 0 : i32
    return %arg0, %c0_i32 : i32, i32
  }
  func.func @transform_5(%arg0: i32) -> (i32, i32) {
    %c0_i32 = arith.constant 0 : i32
    %c0_i32_0 = arith.constant 0 : i32
    return %arg0, %c0_i32 : i32, i32
  }
}

</mosaic_0001>

<bundles_post_ra>
// kernel: graph_att_forward.2
= control target key start
LH: loop header
LB: loop body
LE: loop exit
PB: predicated region body
PF: predicated region fallthrough
CT: control target
= control target key end

     0   :  { %vm35_vm0 = vcmask 261120   ;;  %s111_s1 = inlined_call_operand.vmem [shape: bf16[32,32], index: 1, kind: input, shape index: {}]   ;;  %s112_s0 = inlined_call_operand.vmem [shape: bf16[16,32], index: 0, kind: input, shape index: {}]   ;;  %s113_s2 = inlined_call_operand.vmem [shape: f32[16,32], index: 2, kind: output, shape index: {}]  }
   0x1   :  { %v80_v0 = vld [vmem:[%s111_s1 + $0x8] sm:$0xff]  ;;  %v79_v1 = vld [vmem:[%s111_s1] sm:$0xff] }
   0x2   :  { %45 = vmatpush.bf16.msra.mxu0 %v80_v0  ;;  %v78_v2 = vld [vmem:[%s112_s0] sm:$0xff] }
   0x6   :  { %46 = vmatpush.bf16.msra.mxu0 %v79_v1 }
   0x9   :  { %77 = vmatmul.msk.bf16.vlgmr.msra.gmra.mxu0 %vm35_vm0, %v78_v2 }
  0x86   :  { %v48_v3 = vpop.f32.mrf.mxu0 }
  0x87   :  { %vm53_vm1 = vcmp.ge.f32.partialorder %v48_v3, 0.0  ;;  %v55_v4 = vmul.f32 0.2, %v48_v3 }
  0x89   :  { %v57_v5 = vsel %vm53_vm1, %v48_v3, %v55_v4 }
  0x8a   :  { %59 = vst.msk [vmem:[%s113_s2] sm:$0xff] %vm35_vm0, %v57_v5 }
  0x8e   :  { %v50_v6 = vpop.f32.mrf.mxu0 }
  0x8f   :  { %vm54_vm2 = vcmp.ge.f32.partialorder %v50_v6, 0.0  ;;  %v56_v7 = vmul.f32 0.2, %v50_v6 }
  0x91   :  { %v58_v8 = vsel %vm54_vm2, %v50_v6, %v56_v7 }
  0x92   :  { %60 = vst.msk [vmem:[%s113_s2 + $0x8] sm:$0xff] %vm35_vm0, %v58_v8 }

// kernel: graph_att_forward.3
= control target key start
LH: loop header
LB: loop body
LE: loop exit
PB: predicated region body
PF: predicated region fallthrough
CT: control target
= control target key end

     0   :  { %vm32_vm0 = vcmask 1040384   ;;  %vm37_vm1 = vcmask 1042434   ;;  %vm34_vm2 = vcmask 1041409   ;;  %vm40_vm3 = vcmask 1043459   ;;  %s326_s0 = inlined_call_operand.vmem [shape: bf16[4,32], index: 0, kind: input, shape index: {}]   ;;  %s327_s1 = inlined_call_operand.vmem [shape: bf16[4,8,32], index: 1, kind: input, shape index: {}]   ;;  %s328_s3 = inlined_call_operand.vmem [shape: f32[4,8], index: 3, kind: input, shape index: {}]   ;;  %s329_s4 = inlined_call_operand.vmem [shape: f32[4,8], index: 4, kind: input, shape index: {}]   ;;  %s330_s2 = inlined_call_operand.vmem [shape: bf16[4,8,32], index: 2, kind: input, shape index: {}]   ;;  %s331_s5 = inlined_call_operand.vmem [shape: f32[4,32], index: 5, kind: output, shape index: {}]  }
   0x1   :  { %v20_v0 = vld [vmem:[%s326_s0] sm:$0x3]  ;;  %v234_v3 = vld [vmem:[%s327_s1 + $0x8] sm:$0xff]   ;;  %vm55_vm4 = vcmask 261120   ;;  %v98_v37 = vlaneseq  ;;  %vm109_vm9 = vcmask 60416   ;;  %vm211_vm11 = vcmask 257024  }
   0x2   :  { %v21_v1 = vunpack.c.l.bf16 %v20_v0  ;;  %v219_v2 = vld [vmem:[%s327_s1] sm:$0xff]   ;;  %v224_v6 = vunpack.c.l.bf16 %v234_v3  ;;  %v225_v21 = vunpack.c.h.bf16 %v234_v3 }
   0x3   :  { %v220_v5 = vunpack.c.l.bf16 %v219_v2  ;;  %v221_v17 = vunpack.c.h.bf16 %v219_v2  ;;  %v72_v28 = vld [vmem:[%s328_s3] sm:$0xf]  ;;  %v99_v39 = vand.u32 127, %v98_v37 }
   0x4   :  { %v31_v4 = vrot.slane %v21_v1, 3  ;;  %v217_v29 = vmul.f32 -1.442695, %v72_v28  ;;  %v92_v46 = vld [vmem:[%s329_s4] sm:$0xf] }
   0x5   :  { %vm93_vm8 = vcmp.gt.f32.partialorder %v92_v46, 0.5 }
   0x6   :  { %v33_v7 = vsel %vm32_vm0, %v21_v1, %v31_v4  ;;  %v38_v8 = vsel %vm37_vm1, %v21_v1, %v31_v4  ;;  %v35_v9 = vsel %vm34_vm2, %v21_v1, %v31_v4  ;;  %v41_v10 = vsel %vm40_vm3, %v21_v1, %v31_v4 }
   0x7   :  { %v43_v11 = vperm.slane %v33_v7, 0  ;;  %v39_v12 = vrot.slane %v38_v8, 2  ;;  %v36_v13 = vrot.slane %v35_v9, 1  ;;  %v42_v14 = vrot.slane %v41_v10, 3 }
   0x8   :  { %239 = vpow2.f32 %v217_v29  ;;  %v145_v10 = vshrl.u32 %v98_v37, 7 }
   0x9   :  { %v51_v15 = vmul.f32 %v220_v5, %v43_v11  ;;  %v45_v16 = vperm.slane %v39_v12, 0  ;;  %v44_v18 = vperm.slane %v36_v13, 0  ;;  %v46_v22 = vperm.slane %v42_v14, 0 }
   0xa   :  { %238 = vset.pattern.permute.xlu1 %v145_v10  ;;  %237 = vset.pattern.permute.xlu0 %v145_v10 }
   0xb   :  { %v56_v19 = vsel %vm55_vm4, %v51_v15, 0.0  ;;  %v53_v20 = vmul.f32 %v224_v6, %v45_v16  ;;  %v52_v24 = vmul.f32 %v221_v17, %v44_v18  ;;  %v54_v25 = vmul.f32 %v225_v21, %v46_v22  ;;  %236 = vset.pattern.permute.xlu2 %v145_v10 }
   0xc   :  { %57 = vadd.xlane.f32.xlu0 %v56_v19 }
   0xd   :  { %v62_v23 = vsel %vm55_vm4, %v53_v20, 0.0  ;;  %v59_v26 = vsel %vm55_vm4, %v52_v24, 0.0  ;;  %v65_v27 = vsel %vm55_vm4, %v54_v25, 0.0  ;;  %v227_v24 = vld [vmem:[%s330_s2] sm:$0xff]   ;;  %v235_v25 = vld [vmem:[%s330_s2 + $0x8] sm:$0xff]  }
   0xe   :  { %63 = vadd.xlane.f32.xlu1 %v62_v23  ;;  %v240_v30 = vpop.eup %239 }
   0xf   :  { %v76_v31 = vadd.f32 1.0, %v240_v30 }
  0x11   :  { %241 = vrcp.f32 %v76_v31  ;;  %vm82_vm5 = vweird.f32 %v76_v31  ;;  %v88_v44 = vand.u32 2147483648, %v76_v31  ;;  %v86_v48 = vand.u32 2147483647, %v76_v31 }
  0x13   :  { %v89_v55 = vor.u32 1.1754944e-38, %v88_v44  ;;  %vm87_vm10 = vcmp.eq.f32.partialorder %v86_v48, 8.507059e+37 }
  0x14   :  { %60 = vadd.xlane.f32.xlu0 %v59_v26  ;;  %v228_v26 = vunpack.c.l.bf16 %v227_v24 }
  0x16   :  { %66 = vadd.xlane.f32.xlu1 %v65_v27  ;;  %v233_v27 = vunpack.c.h.bf16 %v235_v25 }
  0x17   :  { %v242_v32 = vpop.eup %241 }
  0x18   :  { %v78_v33 = vmul.f32 %v242_v32, %v76_v31  ;;  %vm83_vm6 = vweird.f32 %v242_v32 }
  0x19   :  { %vm84_vm7 = vmor %vm82_vm5, %vm83_vm6 }
  0x1a   :  { %v79_v36 = vsub.f32 1.0, %v78_v33 }
  0x1c   :  { %v80_v38 = vmul.f32 %v242_v32, %v79_v36  ;;  %v229_v36 = vunpack.c.h.bf16 %v227_v24 }
  0x1e   :  { %v81_v47 = vadd.f32 %v242_v32, %v80_v38 }
  0x20   :  { %v85_v57 = vsel %vm84_vm7, %v242_v32, %v81_v47 }
  0x21   :  { %v90_v61 = vsel %vm87_vm10, %v89_v55, %v85_v57 }
  0x22   :  { %v121_v62 = vsel %vm93_vm8, %v90_v61, -1000000.0 }
  0x23   :  { %v122_v63 = vsel %vm109_vm9, %v121_v62, -inf }
  0x7f   :  { %v58_v34 = vpop.xlane.xlu0 %57 }
  0x80   :  { %v68_v40 = vmul.f32 5.0, %v58_v34 }
  0x81   :  { %v64_v35 = vpop.xlane.xlu1 %63 }
  0x82   :  { %v70_v41 = vmul.f32 5.0, %v64_v35  ;;  %v100_v49 = vperm.slane %v68_v40, %v99_v39  ;;  %v232_v35 = vunpack.c.l.bf16 %v235_v25 }
  0x84   :  { %v102_v52 = vperm.slane %v70_v41, %v99_v39 }
  0x87   :  { %v61_v42 = vpop.xlane.xlu0 %60 }
  0x88   :  { %v69_v43 = vmul.f32 5.0, %v61_v42 }
  0x89   :  { %v67_v45 = vpop.xlane.xlu1 %66 }
  0x8a   :  { %v101_v50 = vperm.slane %v69_v43, %v99_v39  ;;  %v71_v51 = vmul.f32 5.0, %v67_v45 }
  0x8c   :  { %v103_v53 = vperm.slane %v71_v51, %v99_v39  ;;  %v104_v54 = vsel %vm34_vm2, %v101_v50, %v100_v49 }
  0x8d   :  { %v105_v56 = vsel %vm37_vm1, %v102_v52, %v104_v54 }
  0x8e   :  { %v106_v58 = vsel %vm40_vm3, %v103_v53, %v105_v56 }
  0x8f   :  { %v108_v59 = vsel %vm93_vm8, %v106_v58, -1000000.0 }
  0x90   :  { %v110_v60 = vsel %vm109_vm9, %v108_v59, -inf }
  0x91   :  { %111 = vmax.xlane.f32.xlu2 %v110_v60 }
  0x99   :  { %123 = vmax.xlane.f32.xlu2 %v122_v63 }
 0x104   :  { %v112_v0 = vpop.xlane.xlu2 %111 }
 0x105   :  { %v113_v1 = vsub.f32 %v108_v59, %v112_v0 }
 0x107   :  { %v114_v2 = vmul.f32 1.442695, %v113_v1 }
 0x109   :  { %243 = vpow2.f32 %v114_v2 }
 0x10c   :  { %v124_v3 = vpop.xlane.xlu2 %123 }
 0x10d   :  { %v125_v4 = vsub.f32 %v121_v62, %v124_v3 }
 0x10f   :  { %v244_v5 = vpop.eup %243  ;;  %v126_v6 = vmul.f32 1.442695, %v125_v4 }
 0x110   :  { %v116_v7 = vsel %vm109_vm9, %v244_v5, 0.0 }
 0x111   :  { %245 = vpow2.f32 %v126_v6  ;;  %117 = vadd.xlane.f32.xlu0 %v116_v7 }
 0x117   :  { %v246_v8 = vpop.eup %245 }
 0x118   :  { %v128_v9 = vsel %vm109_vm9, %v246_v8, 0.0 }
 0x119   :  { %129 = vadd.xlane.f32.xlu1 %v128_v9 }
 0x184   :  { %v118_v11 = vpop.xlane.xlu0 %117 }
 0x185   :  { %247 = vrcp.f32 %v118_v11 }
 0x18b   :  { %v248_v13 = vpop.eup %247 }
 0x18c   :  { %v130_v12 = vpop.xlane.xlu1 %129  ;;  %v120_v15 = vmul.f32 %v248_v13, %v244_v5 }
 0x18d   :  { %249 = vrcp.f32 %v130_v12 }
 0x193   :  { %v250_v14 = vpop.eup %249 }
 0x194   :  { %v132_v16 = vmul.f32 %v250_v14, %v246_v8 }
 0x196   :  { %v133_v17 = vadd.f32 %v132_v16, %v120_v15 }
 0x198   :  { %v134_v18 = vmul.f32 0.5, %v133_v17 }
 0x19a   :  { %v157_v19 = vperm.slane %v134_v18, 2  ;;  %v150_v20 = vperm.slane %v134_v18, 1  ;;  %v143_v21 = vperm.slane %v134_v18, 0  ;;  %v164_v22 = vperm.slane %v134_v18, 3 }
 0x19c   :  { %162 = vperm.xlu1 %238, %v157_v19   ;;  %155 = vperm.xlu0 %237, %v150_v20  }
 0x19d   :  { %148 = vperm.xlu2 %236, %v143_v21  }
 0x1a5   :  { %169 = vperm.xlu2 %236, %v164_v22  }
 0x1f7   :  { %v149_v23 = vpop.permute.xlu2 %148 }
 0x1f8   :  { %v171_v29 = vmul.f32 %v228_v26, %v149_v23 }
 0x1fa   :  { %v175_v31 = vsel %vm55_vm4, %v171_v29, 0.0 }
 0x1fb   :  { %v176_v33 = vrot.slane %v175_v31, 4 }
 0x1fd   :  { %v177_v37 = vadd.f32 %v176_v33, %v175_v31 }
 0x1ff   :  { %v170_v28 = vpop.permute.xlu2 %169  ;;  %v178_v43 = vrot.slane %v177_v37, 2 }
 0x200   :  { %v174_v30 = vmul.f32 %v233_v27, %v170_v28 }
 0x201   :  { %v179_v49 = vadd.f32 %v178_v43, %v177_v37 }
 0x202   :  { %v196_v32 = vsel %vm55_vm4, %v174_v30, 0.0 }
 0x203   :  { %v197_v34 = vrot.slane %v196_v32, 4  ;;  %v180_v55 = vrot.slane %v179_v49, 1 }
 0x205   :  { %v198_v38 = vadd.f32 %v197_v34, %v196_v32  ;;  %v181_v61 = vadd.f32 %v180_v55, %v179_v49 }
 0x207   :  { %v199_v46 = vrot.slane %v198_v38, 2 }
 0x209   :  { %v200_v52 = vadd.f32 %v199_v46, %v198_v38 }
 0x20b   :  { %v201_v58 = vrot.slane %v200_v52, 1 }
 0x20d   :  { %v202_v0 = vadd.f32 %v201_v58, %v200_v52 }
 0x20e   :  { %v163_v39 = vpop.permute.xlu1 %162  ;;  %v156_v40 = vpop.permute.xlu0 %155 }
 0x20f   :  { %v173_v41 = vmul.f32 %v232_v35, %v163_v39  ;;  %v172_v42 = vmul.f32 %v229_v36, %v156_v40 }
 0x211   :  { %v189_v44 = vsel %vm55_vm4, %v173_v41, 0.0  ;;  %v182_v45 = vsel %vm55_vm4, %v172_v42, 0.0 }
 0x212   :  { %v190_v47 = vrot.slane %v189_v44, 4  ;;  %v183_v48 = vrot.slane %v182_v45, 4 }
 0x214   :  { %v191_v50 = vadd.f32 %v190_v47, %v189_v44  ;;  %v184_v51 = vadd.f32 %v183_v48, %v182_v45 }
 0x216   :  { %v192_v53 = vrot.slane %v191_v50, 2  ;;  %v185_v54 = vrot.slane %v184_v51, 2 }
 0x218   :  { %v193_v56 = vadd.f32 %v192_v53, %v191_v50  ;;  %v186_v57 = vadd.f32 %v185_v54, %v184_v51 }
 0x21a   :  { %v194_v59 = vrot.slane %v193_v56, 1  ;;  %v187_v60 = vrot.slane %v186_v57, 1 }
 0x21c   :  { %v195_v62 = vadd.f32 %v194_v59, %v193_v56  ;;  %v188_v63 = vadd.f32 %v187_v60, %v186_v57 }
 0x21e   :  { %v207_v1 = vsel %vm34_vm2, %v188_v63, %v181_v61 }
 0x21f   :  { %v208_v2 = vsel %vm37_vm1, %v195_v62, %v207_v1 }
 0x220   :  { %v209_v3 = vsel %vm40_vm3, %v202_v0, %v208_v2 }
 0x221   :  { %212 = vst.msk [vmem:[%s331_s5] sm:$0xf] %vm211_vm11, %v209_v3 }

</bundles_post_ra>
